<compile_context>
chip_gen: v6e
topology: v6e:2x2x1
jax: 0.10.0
libtpu: 0.0.40
codegen_flags: <defaults>
</compile_context>

<pallas_src>
import math

import jax
import jax.numpy as jnp
from jax.experimental import pallas as pl
from jax.experimental.pallas import tpu as pltpu


def mlp_kernel(x_ref, *refs):
    """Fused MLP forward on a (features, tile_b) activation slab.

    refs = (w0, b0, w1, b1, ..., out_ref)
      w_i : (fan_out, fan_in)   -- PyTorch Linear layout, resident in VMEM
      b_i : (fan_out, 1)
      out : (n_out, tile_b)
    """
    out_ref = refs[-1]
    param_refs = refs[:-1]
    n_layers = len(param_refs) // 2
    tile_b = x_ref.shape[-1]

    h = x_ref[...].astype(jnp.float32)                      # (fan_in, tile_b)
    for i in range(n_layers):
        w_ref = param_refs[2 * i]                           # (fan_out, fan_in)
        b_ref = param_refs[2 * i + 1]                       # (fan_out, 1)
        fan_out, fan_in = w_ref.shape
        b = b_ref[...].astype(jnp.float32)                  # (fan_out, 1)

        if fan_in <= 32:
            # VPU path: outer-product FMAs, no MXU push/pop latency.
            acc = jnp.broadcast_to(b, (fan_out, tile_b))
            for k in range(fan_in):
                w_col = w_ref[:, k:k + 1].astype(jnp.float32)   # (fan_out, 1)
                acc = acc + w_col * h[k:k + 1, :]               # lane x sublane bcast
        else:
            # Fallback for wide layers: MXU matmul with f32 accumulation.
            acc = jnp.dot(w_ref[...].astype(jnp.float32), h,
                          preferred_element_type=jnp.float32) + b

        h = acc
        if i < n_layers - 1:
            h = jnp.maximum(h, 0.0)                         # ReLU on hidden layers

    out_ref[...] = h.astype(out_ref.dtype)                  # lane-dense store


def init_net_params(key, n_input=2, n_output=2, n_hidden=20, n_layer=2,
                    dtype=jnp.float32):
    """Deterministic init mimicking torch.nn.Linear (U[-1/sqrt(fan_in), +]).

    Weights are stored in PyTorch layout: (out_features, in_features).
    """
    dims = [n_input] + [n_hidden] * (n_layer - 1) + [n_output]
    params = []
    for i in range(len(dims) - 1):
        fan_in, fan_out = dims[i], dims[i + 1]
        key, kw, kb = jax.random.split(key, 3)
        bound = 1.0 / math.sqrt(fan_in)
        w = jax.random.uniform(kw, (fan_out, fan_in), dtype, -bound, bound)
        b = jax.random.uniform(kb, (fan_out,), dtype, -bound, bound)
        params.append((w, b))
    return params


def net_forward(x, params, tile_b=512):
    """x: (batch, n_input) -> (batch, n_output). One fused Pallas kernel."""
    B, n_in = x.shape
    n_out = params[-1][0].shape[0]

    # Batch tile: multiple of 128 (lane width), big enough to amortize per-step
    # overhead, small enough for v7x's 64 MiB VMEM / 32 MiB scoped default.
    tile_b = max(128, min(int(tile_b), pl.cdiv(B, 128) * 128))
    b_pad = pl.cdiv(B, tile_b) * tile_b
    grid = (b_pad // tile_b,)

    # Flip layout once in the wrapper: batch on the lane axis, zero-pad ragged tail.
    x_t = jnp.zeros((n_in, b_pad), x.dtype).at[:, :B].set(x.T)

    flat = []
    in_specs = [pl.BlockSpec((n_in, tile_b), lambda i: (0, i))]
    for w, b in params:
        flat.append(w)                       # (fan_out, fan_in)
        flat.append(b.reshape(-1, 1))        # (fan_out, 1)
    for p in flat:
        # Full-array blocks, same index every step -> resident in VMEM.
        in_specs.append(pl.BlockSpec(p.shape, lambda i: (0, 0)))

    out_specs = pl.BlockSpec((n_out, tile_b), lambda i: (0, i))

    out_t = pl.pallas_call(
        mlp_kernel,
        out_shape=jax.ShapeDtypeStruct((n_out, b_pad), x.dtype),
        grid=grid,
        in_specs=in_specs,
        out_specs=out_specs,
        compiler_params=pltpu.CompilerParams(
            dimension_semantics=("parallel",),          # megacore / v7x 2-TC split
            vmem_limit_bytes=32 * 1024 * 1024,          # explicit, fits all chips
        ),
    )(x_t, *flat)

    return out_t.T[:B]


def net_forward_ref(x, params):
    """Plain-JAX reference (PyTorch Linear semantics: x @ W.T + b)."""
    h = x.astype(jnp.float32)
    for i, (w, b) in enumerate(params):
        h = h @ w.astype(jnp.float32).T + b.astype(jnp.float32)
        if i < len(params) - 1:
            h = jnp.maximum(h, 0.0)
    return h.astype(x.dtype)


if __name__ == "__main__":
    key = jax.random.PRNGKey(0)
    k_params, k_x = jax.random.split(key)

    n_input, n_output, n_hidden, n_layer = 2, 2, 20, 2
    batch = 8

    params = init_net_params(k_params, n_input, n_output, n_hidden, n_layer)
    x = jax.random.normal(k_x, (batch, n_input), dtype=jnp.float32)

    out = jax.block_until_ready(net_forward(x, params))
    ref = net_forward_ref(x, params)

    assert out.shape == (batch, n_output)
    assert jnp.allclose(out, ref, atol=1e-5, rtol=1e-5)

    print("KERNEL_OK")
</pallas_src>

<mosaic_0001>
module attributes {stable_mosaic.version = 11 : i64} {
  func.func @mlp_kernel(%arg0: i32, %arg1: memref<2x128xf32, #tpu.memory_space<vmem>>, %arg2: memref<20x2xf32, #tpu.memory_space<vmem>>, %arg3: memref<20x1xf32, #tpu.memory_space<vmem>>, %arg4: memref<2x20xf32, #tpu.memory_space<vmem>>, %arg5: memref<2x1xf32, #tpu.memory_space<vmem>>, %arg6: memref<2x128xf32, #tpu.memory_space<vmem>>) attributes {dimension_semantics = [#tpu.dimension_semantics<parallel>], iteration_bounds = array<i64: 1>, scalar_prefetch = 0 : i64, scratch_operands = 0 : i64, tpu.core_type = #tpu.core_type<tc>, window_params = [{transform_indices = @transform_0, window_bounds = array<i64: 2, 128>}, {pipeline_mode = #tpu.pipeline_mode<synchronous>, transform_indices = @transform_1, window_bounds = array<i64: 20, 2>}, {pipeline_mode = #tpu.pipeline_mode<synchronous>, transform_indices = @transform_2, window_bounds = array<i64: 20, 1>}, {pipeline_mode = #tpu.pipeline_mode<synchronous>, transform_indices = @transform_3, window_bounds = array<i64: 2, 20>}, {pipeline_mode = #tpu.pipeline_mode<synchronous>, transform_indices = @transform_4, window_bounds = array<i64: 2, 1>}, {transform_indices = @transform_5, window_bounds = array<i64: 2, 128>}]} {
    %c0 = arith.constant 0 : index
    %c0_0 = arith.constant 0 : index
    %0 = vector.load %arg1[%c0, %c0_0] : memref<2x128xf32, #tpu.memory_space<vmem>>, vector<2x128xf32>
    %c0_1 = arith.constant 0 : index
    %c0_2 = arith.constant 0 : index
    %1 = vector.load %arg3[%c0_1, %c0_2] : memref<20x1xf32, #tpu.memory_space<vmem>>, vector<20x1xf32>
    %2 = vector.shape_cast %1 : vector<20x1xf32> to vector<20x1xf32>
    %3 = vector.broadcast %2 : vector<20x1xf32> to vector<20x128xf32>
    %c0_3 = arith.constant 0 : index
    %c0_4 = arith.constant 0 : index
    %4 = vector.load %arg2[%c0_3, %c0_4] : memref<20x2xf32, #tpu.memory_space<vmem>>, vector<20x1xf32>
    %5 = vector.extract_strided_slice %0 {offsets = [0, 0], sizes = [1, 128], strides = [1, 1]} : vector<2x128xf32> to vector<1x128xf32>
    %6 = vector.broadcast %4 : vector<20x1xf32> to vector<20x128xf32>
    %7 = vector.broadcast %5 : vector<1x128xf32> to vector<20x128xf32>
    %8 = arith.mulf %6, %7 : vector<20x128xf32>
    %9 = arith.addf %3, %8 : vector<20x128xf32>
    %c0_5 = arith.constant 0 : index
    %c1 = arith.constant 1 : index
    %10 = vector.load %arg2[%c0_5, %c1] : memref<20x2xf32, #tpu.memory_space<vmem>>, vector<20x1xf32>
    %11 = vector.extract_strided_slice %0 {offsets = [1, 0], sizes = [1, 128], strides = [1, 1]} : vector<2x128xf32> to vector<1x128xf32>
    %12 = vector.broadcast %10 : vector<20x1xf32> to vector<20x128xf32>
    %13 = vector.broadcast %11 : vector<1x128xf32> to vector<20x128xf32>
    %14 = arith.mulf %12, %13 : vector<20x128xf32>
    %15 = arith.addf %9, %14 : vector<20x128xf32>
    %cst = arith.constant 0.000000e+00 : f32
    %16 = vector.broadcast %cst : f32 to vector<20x128xf32>
    %17 = arith.maximumf %15, %16 : vector<20x128xf32>
    %c0_6 = arith.constant 0 : index
    %c0_7 = arith.constant 0 : index
    %18 = vector.load %arg5[%c0_6, %c0_7] : memref<2x1xf32, #tpu.memory_space<vmem>>, vector<2x1xf32>
    %19 = vector.shape_cast %18 : vector<2x1xf32> to vector<2x1xf32>
    %20 = vector.broadcast %19 : vector<2x1xf32> to vector<2x128xf32>
    %c0_8 = arith.constant 0 : index
    %c0_9 = arith.constant 0 : index
    %21 = vector.load %arg4[%c0_8, %c0_9] : memref<2x20xf32, #tpu.memory_space<vmem>>, vector<2x1xf32>
    %22 = vector.extract_strided_slice %17 {offsets = [0, 0], sizes = [1, 128], strides = [1, 1]} : vector<20x128xf32> to vector<1x128xf32>
    %23 = vector.broadcast %21 : vector<2x1xf32> to vector<2x128xf32>
    %24 = vector.broadcast %22 : vector<1x128xf32> to vector<2x128xf32>
    %25 = arith.mulf %23, %24 : vector<2x128xf32>
    %26 = arith.addf %20, %25 : vector<2x128xf32>
    %c0_10 = arith.constant 0 : index
    %c1_11 = arith.constant 1 : index
    %27 = vector.load %arg4[%c0_10, %c1_11] : memref<2x20xf32, #tpu.memory_space<vmem>>, vector<2x1xf32>
    %28 = vector.extract_strided_slice %17 {offsets = [1, 0], sizes = [1, 128], strides = [1, 1]} : vector<20x128xf32> to vector<1x128xf32>
    %29 = vector.broadcast %27 : vector<2x1xf32> to vector<2x128xf32>
    %30 = vector.broadcast %28 : vector<1x128xf32> to vector<2x128xf32>
    %31 = arith.mulf %29, %30 : vector<2x128xf32>
    %32 = arith.addf %26, %31 : vector<2x128xf32>
    %c0_12 = arith.constant 0 : index
    %c2 = arith.constant 2 : index
    %33 = vector.load %arg4[%c0_12, %c2] : memref<2x20xf32, #tpu.memory_space<vmem>>, vector<2x1xf32>
    %34 = vector.extract_strided_slice %17 {offsets = [2, 0], sizes = [1, 128], strides = [1, 1]} : vector<20x128xf32> to vector<1x128xf32>
    %35 = vector.broadcast %33 : vector<2x1xf32> to vector<2x128xf32>
    %36 = vector.broadcast %34 : vector<1x128xf32> to vector<2x128xf32>
    %37 = arith.mulf %35, %36 : vector<2x128xf32>
    %38 = arith.addf %32, %37 : vector<2x128xf32>
    %c0_13 = arith.constant 0 : index
    %c3 = arith.constant 3 : index
    %39 = vector.load %arg4[%c0_13, %c3] : memref<2x20xf32, #tpu.memory_space<vmem>>, vector<2x1xf32>
    %40 = vector.extract_strided_slice %17 {offsets = [3, 0], sizes = [1, 128], strides = [1, 1]} : vector<20x128xf32> to vector<1x128xf32>
    %41 = vector.broadcast %39 : vector<2x1xf32> to vector<2x128xf32>
    %42 = vector.broadcast %40 : vector<1x128xf32> to vector<2x128xf32>
    %43 = arith.mulf %41, %42 : vector<2x128xf32>
    %44 = arith.addf %38, %43 : vector<2x128xf32>
    %c0_14 = arith.constant 0 : index
    %c4 = arith.constant 4 : index
    %45 = vector.load %arg4[%c0_14, %c4] : memref<2x20xf32, #tpu.memory_space<vmem>>, vector<2x1xf32>
    %46 = vector.extract_strided_slice %17 {offsets = [4, 0], sizes = [1, 128], strides = [1, 1]} : vector<20x128xf32> to vector<1x128xf32>
    %47 = vector.broadcast %45 : vector<2x1xf32> to vector<2x128xf32>
    %48 = vector.broadcast %46 : vector<1x128xf32> to vector<2x128xf32>
    %49 = arith.mulf %47, %48 : vector<2x128xf32>
    %50 = arith.addf %44, %49 : vector<2x128xf32>
    %c0_15 = arith.constant 0 : index
    %c5 = arith.constant 5 : index
    %51 = vector.load %arg4[%c0_15, %c5] : memref<2x20xf32, #tpu.memory_space<vmem>>, vector<2x1xf32>
    %52 = vector.extract_strided_slice %17 {offsets = [5, 0], sizes = [1, 128], strides = [1, 1]} : vector<20x128xf32> to vector<1x128xf32>
    %53 = vector.broadcast %51 : vector<2x1xf32> to vector<2x128xf32>
    %54 = vector.broadcast %52 : vector<1x128xf32> to vector<2x128xf32>
    %55 = arith.mulf %53, %54 : vector<2x128xf32>
    %56 = arith.addf %50, %55 : vector<2x128xf32>
    %c0_16 = arith.constant 0 : index
    %c6 = arith.constant 6 : index
    %57 = vector.load %arg4[%c0_16, %c6] : memref<2x20xf32, #tpu.memory_space<vmem>>, vector<2x1xf32>
    %58 = vector.extract_strided_slice %17 {offsets = [6, 0], sizes = [1, 128], strides = [1, 1]} : vector<20x128xf32> to vector<1x128xf32>
    %59 = vector.broadcast %57 : vector<2x1xf32> to vector<2x128xf32>
    %60 = vector.broadcast %58 : vector<1x128xf32> to vector<2x128xf32>
    %61 = arith.mulf %59, %60 : vector<2x128xf32>
    %62 = arith.addf %56, %61 : vector<2x128xf32>
    %c0_17 = arith.constant 0 : index
    %c7 = arith.constant 7 : index
    %63 = vector.load %arg4[%c0_17, %c7] : memref<2x20xf32, #tpu.memory_space<vmem>>, vector<2x1xf32>
    %64 = vector.extract_strided_slice %17 {offsets = [7, 0], sizes = [1, 128], strides = [1, 1]} : vector<20x128xf32> to vector<1x128xf32>
    %65 = vector.broadcast %63 : vector<2x1xf32> to vector<2x128xf32>
    %66 = vector.broadcast %64 : vector<1x128xf32> to vector<2x128xf32>
    %67 = arith.mulf %65, %66 : vector<2x128xf32>
    %68 = arith.addf %62, %67 : vector<2x128xf32>
    %c0_18 = arith.constant 0 : index
    %c8 = arith.constant 8 : index
    %69 = vector.load %arg4[%c0_18, %c8] : memref<2x20xf32, #tpu.memory_space<vmem>>, vector<2x1xf32>
    %70 = vector.extract_strided_slice %17 {offsets = [8, 0], sizes = [1, 128], strides = [1, 1]} : vector<20x128xf32> to vector<1x128xf32>
    %71 = vector.broadcast %69 : vector<2x1xf32> to vector<2x128xf32>
    %72 = vector.broadcast %70 : vector<1x128xf32> to vector<2x128xf32>
    %73 = arith.mulf %71, %72 : vector<2x128xf32>
    %74 = arith.addf %68, %73 : vector<2x128xf32>
    %c0_19 = arith.constant 0 : index
    %c9 = arith.constant 9 : index
    %75 = vector.load %arg4[%c0_19, %c9] : memref<2x20xf32, #tpu.memory_space<vmem>>, vector<2x1xf32>
    %76 = vector.extract_strided_slice %17 {offsets = [9, 0], sizes = [1, 128], strides = [1, 1]} : vector<20x128xf32> to vector<1x128xf32>
    %77 = vector.broadcast %75 : vector<2x1xf32> to vector<2x128xf32>
    %78 = vector.broadcast %76 : vector<1x128xf32> to vector<2x128xf32>
    %79 = arith.mulf %77, %78 : vector<2x128xf32>
    %80 = arith.addf %74, %79 : vector<2x128xf32>
    %c0_20 = arith.constant 0 : index
    %c10 = arith.constant 10 : index
    %81 = vector.load %arg4[%c0_20, %c10] : memref<2x20xf32, #tpu.memory_space<vmem>>, vector<2x1xf32>
    %82 = vector.extract_strided_slice %17 {offsets = [10, 0], sizes = [1, 128], strides = [1, 1]} : vector<20x128xf32> to vector<1x128xf32>
    %83 = vector.broadcast %81 : vector<2x1xf32> to vector<2x128xf32>
    %84 = vector.broadcast %82 : vector<1x128xf32> to vector<2x128xf32>
    %85 = arith.mulf %83, %84 : vector<2x128xf32>
    %86 = arith.addf %80, %85 : vector<2x128xf32>
    %c0_21 = arith.constant 0 : index
    %c11 = arith.constant 11 : index
    %87 = vector.load %arg4[%c0_21, %c11] : memref<2x20xf32, #tpu.memory_space<vmem>>, vector<2x1xf32>
    %88 = vector.extract_strided_slice %17 {offsets = [11, 0], sizes = [1, 128], strides = [1, 1]} : vector<20x128xf32> to vector<1x128xf32>
    %89 = vector.broadcast %87 : vector<2x1xf32> to vector<2x128xf32>
    %90 = vector.broadcast %88 : vector<1x128xf32> to vector<2x128xf32>
    %91 = arith.mulf %89, %90 : vector<2x128xf32>
    %92 = arith.addf %86, %91 : vector<2x128xf32>
    %c0_22 = arith.constant 0 : index
    %c12 = arith.constant 12 : index
    %93 = vector.load %arg4[%c0_22, %c12] : memref<2x20xf32, #tpu.memory_space<vmem>>, vector<2x1xf32>
    %94 = vector.extract_strided_slice %17 {offsets = [12, 0], sizes = [1, 128], strides = [1, 1]} : vector<20x128xf32> to vector<1x128xf32>
    %95 = vector.broadcast %93 : vector<2x1xf32> to vector<2x128xf32>
    %96 = vector.broadcast %94 : vector<1x128xf32> to vector<2x128xf32>
    %97 = arith.mulf %95, %96 : vector<2x128xf32>
    %98 = arith.addf %92, %97 : vector<2x128xf32>
    %c0_23 = arith.constant 0 : index
    %c13 = arith.constant 13 : index
    %99 = vector.load %arg4[%c0_23, %c13] : memref<2x20xf32, #tpu.memory_space<vmem>>, vector<2x1xf32>
    %100 = vector.extract_strided_slice %17 {offsets = [13, 0], sizes = [1, 128], strides = [1, 1]} : vector<20x128xf32> to vector<1x128xf32>
    %101 = vector.broadcast %99 : vector<2x1xf32> to vector<2x128xf32>
    %102 = vector.broadcast %100 : vector<1x128xf32> to vector<2x128xf32>
    %103 = arith.mulf %101, %102 : vector<2x128xf32>
    %104 = arith.addf %98, %103 : vector<2x128xf32>
    %c0_24 = arith.constant 0 : index
    %c14 = arith.constant 14 : index
    %105 = vector.load %arg4[%c0_24, %c14] : memref<2x20xf32, #tpu.memory_space<vmem>>, vector<2x1xf32>
    %106 = vector.extract_strided_slice %17 {offsets = [14, 0], sizes = [1, 128], strides = [1, 1]} : vector<20x128xf32> to vector<1x128xf32>
    %107 = vector.broadcast %105 : vector<2x1xf32> to vector<2x128xf32>
    %108 = vector.broadcast %106 : vector<1x128xf32> to vector<2x128xf32>
    %109 = arith.mulf %107, %108 : vector<2x128xf32>
    %110 = arith.addf %104, %109 : vector<2x128xf32>
    %c0_25 = arith.constant 0 : index
    %c15 = arith.constant 15 : index
    %111 = vector.load %arg4[%c0_25, %c15] : memref<2x20xf32, #tpu.memory_space<vmem>>, vector<2x1xf32>
    %112 = vector.extract_strided_slice %17 {offsets = [15, 0], sizes = [1, 128], strides = [1, 1]} : vector<20x128xf32> to vector<1x128xf32>
    %113 = vector.broadcast %111 : vector<2x1xf32> to vector<2x128xf32>
    %114 = vector.broadcast %112 : vector<1x128xf32> to vector<2x128xf32>
    %115 = arith.mulf %113, %114 : vector<2x128xf32>
    %116 = arith.addf %110, %115 : vector<2x128xf32>
    %c0_26 = arith.constant 0 : index
    %c16 = arith.constant 16 : index
    %117 = vector.load %arg4[%c0_26, %c16] : memref<2x20xf32, #tpu.memory_space<vmem>>, vector<2x1xf32>
    %118 = vector.extract_strided_slice %17 {offsets = [16, 0], sizes = [1, 128], strides = [1, 1]} : vector<20x128xf32> to vector<1x128xf32>
    %119 = vector.broadcast %117 : vector<2x1xf32> to vector<2x128xf32>
    %120 = vector.broadcast %118 : vector<1x128xf32> to vector<2x128xf32>
    %121 = arith.mulf %119, %120 : vector<2x128xf32>
    %122 = arith.addf %116, %121 : vector<2x128xf32>
    %c0_27 = arith.constant 0 : index
    %c17 = arith.constant 17 : index
    %123 = vector.load %arg4[%c0_27, %c17] : memref<2x20xf32, #tpu.memory_space<vmem>>, vector<2x1xf32>
    %124 = vector.extract_strided_slice %17 {offsets = [17, 0], sizes = [1, 128], strides = [1, 1]} : vector<20x128xf32> to vector<1x128xf32>
    %125 = vector.broadcast %123 : vector<2x1xf32> to vector<2x128xf32>
    %126 = vector.broadcast %124 : vector<1x128xf32> to vector<2x128xf32>
    %127 = arith.mulf %125, %126 : vector<2x128xf32>
    %128 = arith.addf %122, %127 : vector<2x128xf32>
    %c0_28 = arith.constant 0 : index
    %c18 = arith.constant 18 : index
    %129 = vector.load %arg4[%c0_28, %c18] : memref<2x20xf32, #tpu.memory_space<vmem>>, vector<2x1xf32>
    %130 = vector.extract_strided_slice %17 {offsets = [18, 0], sizes = [1, 128], strides = [1, 1]} : vector<20x128xf32> to vector<1x128xf32>
    %131 = vector.broadcast %129 : vector<2x1xf32> to vector<2x128xf32>
    %132 = vector.broadcast %130 : vector<1x128xf32> to vector<2x128xf32>
    %133 = arith.mulf %131, %132 : vector<2x128xf32>
    %134 = arith.addf %128, %133 : vector<2x128xf32>
    %c0_29 = arith.constant 0 : index
    %c19 = arith.constant 19 : index
    %135 = vector.load %arg4[%c0_29, %c19] : memref<2x20xf32, #tpu.memory_space<vmem>>, vector<2x1xf32>
    %136 = vector.extract_strided_slice %17 {offsets = [19, 0], sizes = [1, 128], strides = [1, 1]} : vector<20x128xf32> to vector<1x128xf32>
    %137 = vector.broadcast %135 : vector<2x1xf32> to vector<2x128xf32>
    %138 = vector.broadcast %136 : vector<1x128xf32> to vector<2x128xf32>
    %139 = arith.mulf %137, %138 : vector<2x128xf32>
    %140 = arith.addf %134, %139 : vector<2x128xf32>
    %c0_30 = arith.constant 0 : index
    %c0_31 = arith.constant 0 : index
    %141 = vector.load %arg6[%c0_30, %c0_31] : memref<2x128xf32, #tpu.memory_space<vmem>>, vector<2x128xf32>
    tpu.vector_store %arg6[%c0_30, %c0_31], %140 {strides = array<i32>} : memref<2x128xf32, #tpu.memory_space<vmem>>, vector<2x128xf32>,
    return
  }
  func.func @transform_0(%arg0: i32) -> (i32, i32) {
    %c0_i32 = arith.constant 0 : i32
    %c0_i32_0 = arith.constant 0 : i32
    return %c0_i32, %arg0 : i32, i32
  }
  func.func @transform_1(%arg0: i32) -> (i32, i32) {
    %c0_i32 = arith.constant 0 : i32
    %c0_i32_0 = arith.constant 0 : i32
    %c0_i32_1 = arith.constant 0 : i32
    return %c0_i32, %c0_i32_0 : i32, i32
  }
  func.func @transform_2(%arg0: i32) -> (i32, i32) {
    %c0_i32 = arith.constant 0 : i32
    %c0_i32_0 = arith.constant 0 : i32
    %c0_i32_1 = arith.constant 0 : i32
    return %c0_i32, %c0_i32_0 : i32, i32
  }
  func.func @transform_3(%arg0: i32) -> (i32, i32) {
    %c0_i32 = arith.constant 0 : i32
    %c0_i32_0 = arith.constant 0 : i32
    %c0_i32_1 = arith.constant 0 : i32
    return %c0_i32, %c0_i32_0 : i32, i32
  }
  func.func @transform_4(%arg0: i32) -> (i32, i32) {
    %c0_i32 = arith.constant 0 : i32
    %c0_i32_0 = arith.constant 0 : i32
    %c0_i32_1 = arith.constant 0 : i32
    return %c0_i32, %c0_i32_0 : i32, i32
  }
  func.func @transform_5(%arg0: i32) -> (i32, i32) {
    %c0_i32 = arith.constant 0 : i32
    %c0_i32_0 = arith.constant 0 : i32
    return %c0_i32, %arg0 : i32, i32
  }
}

</mosaic_0001>

<bundles_post_ra>
// kernel: tpu_custom_call.1
= control target key start
LH: loop header
LB: loop body
LE: loop exit
PB: predicated region body
PF: predicated region fallthrough
CT: control target
= control target key end

     0   :  { %v387_v1 = vmov 1   ;;  %v388_v2 = vmov 0   ;;  %s537_s0 = inlined_call_operand.vmem [shape: f32[2,128], index: 0, kind: input, shape index: {}]   ;;  %s538_s1 = inlined_call_operand.vmem [shape: f32[20,2], index: 1, kind: input, shape index: {}]   ;;  %s539_s2 = inlined_call_operand.vmem [shape: f32[20,1], index: 2, kind: input, shape index: {}]   ;;  %s540_s3 = inlined_call_operand.vmem [shape: f32[2,20], index: 3, kind: input, shape index: {}]   ;;  %s541_s4 = inlined_call_operand.vmem [shape: f32[2,1], index: 4, kind: input, shape index: {}]   ;;  %s542_s5 = inlined_call_operand.hbm [shape: f32[2,128], index: 5, kind: output, shape index: {}]  }
   0x1   :  { %v40_v0 = vld [vmem:[%s538_s1] sm:$0xff]  ;;  %338 = vset.pattern.permute.xlu1 %v387_v1  ;;  %337 = vset.pattern.permute.xlu0 %v388_v2  ;;  %v23_v4 = vld [vmem:[%s539_s2 + $0x8] sm:$0xff] }
   0x2   :  { %69 = vperm.xlu1 %338, %v40_v0   ;;  %45 = vperm.xlu0 %337, %v40_v0   ;;  %v22_v3 = vld [vmem:[%s539_s2] sm:$0xff] }
   0x3   :  { %10 = vsyncpa [#allocation3], 0  ;;  %v452_v5 = vld [vmem:[%s540_s3] sm:$0x3]  ;;  %v389_v7 = vmov 2   ;;  %v41_v8 = vld [vmem:[%s538_s1 + $0x8] sm:$0xff]  ;;  %v58_v28 = vlaneseq }
   0x4   :  { %v93_v6 = vld [vmem:[%s541_s4] sm:$0x3]  ;;  %v390_v9 = vmov 3   ;;  %v391_v10 = vmov 5   ;;  %v392_v11 = vmov 8   ;;  %v393_v12 = vmov 4  }
   0x5   :  { %v42_v13 = vld [vmem:[%s538_s1 + $0x10] sm:$0xf]  ;;  %v394_v14 = vmov 6   ;;  %v395_v15 = vmov 7   ;;  %v396_v16 = vmov 14   ;;  %v397_v17 = vmov 9  }
   0x6   :  { %339 = vset.pattern.permute.xlu1 %v388_v2  ;;  %27 = vperm.xlu0 %337, %v22_v3   ;;  %v398_v18 = vmov 17   ;;  %v399_v19 = vmov 10   ;;  %v400_v20 = vmov 19   ;;  %v401_v21 = vmov 11   ;;  %v24_v22 = vld [vmem:[%s539_s2 + $0x10] sm:$0xf] }
   0x7   :  { %32 = vperm.xlu1 %339, %v23_v4   ;;  %v402_v23 = vmov 12   ;;  %v403_v24 = vmov 13   ;;  %v404_v25 = vmov 15   ;;  %v405_v26 = vmov 16   ;;  %v21_v32 = vld [vmem:[%s537_s0] sm:$0x3] }
   0x8   :  { %v406_v27 = vmov 18   ;;  %v489_v29 = vshrl.u32 %v58_v28, 7  ;;  %s407_s0 = smov [#allocation2]  }
   0x9   :  { %s308_s7 = sshll.u32 %s407_s0, 4  ;;  %s309_s7 = int_to_ptr.vmem [resolvable:$true] %s308_s7 }
   0xa   :  { %102 = vperm.xlu0 %337, %v452_v5   ;;  %v492_v31 = vsub.s32 0, %v489_v29  ;;  %v501_v36 = vsub.s32 1, %v489_v29  ;;  %v511_v56 = vsub.s32 2, %v489_v29  ;;  %v514_v57 = vsub.s32 3, %v489_v29  ;;  %s365_s8 = scalar_lea.vmem %s309_s7, 32  ;;  %p370_p1 = scmp.lt.s32.totalorder %s309_s7, %s309_s7 }
   0xb   :  { %96 = vperm.xlu1 %339, %v93_v6   ;;  %v147_v61 = vsub.s32 4, %v489_v29  ;;  %v157_v6 = vsub.s32 5, %v489_v29  ;;  %p366_p0 = scmp.ne.s32.totalorder %s309_s7, %s365_s8  ;;  %p371_p2 = scmp.lt.s32.totalorder %s365_s8, %s365_s8 }
   0xc   :  { %v498_v34 = vrot.slane %v21_v32, %v492_v31  ;;  %v505_v40 = vrot.slane %v21_v32, %v501_v36 }
   0xd   :  { %p372_p3 = por %p371_p2, %p370_p1 }
   0xe   :  { %340 = vset.pattern.permute.xlu0 %v387_v1 }
   0xf   :  { %341 = vset.pattern.permute.xlu1 %v389_v7  ;;  %112 = vperm.xlu0 %340, %v452_v5   ;;  %p373_p4 = pnand %p372_p3, %p366_p0 }
  0x10   :  { %122 = vperm.xlu1 %341, %v452_v5  }
  0x13   :  { %343 = vset.pattern.permute.xlu0 %v390_v9 }
  0x14   :  { %342 = vset.pattern.permute.xlu1 %v388_v2  ;;  %132 = vperm.xlu0 %343, %v452_v5  }
  0x15   :  { %50 = vperm.xlu1 %342, %v41_v8  }
  0x18   :  { %346 = vset.pattern.permute.xlu0 %v391_v10 }
  0x19   :  { %344 = vset.pattern.permute.xlu1 %v387_v1  ;;  %152 = vperm.xlu0 %346, %v452_v5  }
  0x1a   :  { %73 = vperm.xlu1 %344, %v41_v8  }
  0x1d   :  { %349 = vset.pattern.permute.xlu0 %v392_v11  ;;  %v167_v11 = vsub.s32 6, %v489_v29 }
  0x1e   :  { %345 = vset.pattern.permute.xlu1 %v393_v12  ;;  %182 = vperm.xlu0 %349, %v452_v5  }
  0x1f   :  { %142 = vperm.xlu1 %345, %v452_v5  }
  0x22   :  { %352 = vset.pattern.permute.xlu0 %v388_v2 }
  0x23   :  { %347 = vset.pattern.permute.xlu1 %v394_v14  ;;  %55 = vperm.xlu0 %352, %v42_v13  }
  0x24   :  { %162 = vperm.xlu1 %347, %v452_v5  }
  0x27   :  { %355 = vset.pattern.permute.xlu0 %v387_v1 }
  0x28   :  { %348 = vset.pattern.permute.xlu1 %v395_v15  ;;  %77 = vperm.xlu0 %355, %v42_v13  }
  0x29   :  { %172 = vperm.xlu1 %348, %v452_v5  }
  0x2c   :  { %358 = vset.pattern.permute.xlu0 %v396_v16 }
  0x2d   :  { %350 = vset.pattern.permute.xlu1 %v397_v17  ;;  %242 = vperm.xlu0 %358, %v452_v5   ;;  %v177_v17 = vsub.s32 7, %v489_v29 }
  0x2e   :  { %192 = vperm.xlu1 %350, %v452_v5  }
  0x31   :  { %361 = vset.pattern.permute.xlu0 %v398_v18 }
  0x32   :  { %351 = vset.pattern.permute.xlu1 %v399_v19  ;;  %272 = vperm.xlu0 %361, %v452_v5  }
  0x33   :  { %202 = vperm.xlu1 %351, %v452_v5  }
  0x36   :  { %364 = vset.pattern.permute.xlu0 %v400_v20 }
  0x37   :  { %353 = vset.pattern.permute.xlu1 %v401_v21 }
  0x38   :  { %212 = vperm.xlu1 %353, %v452_v5  }
  0x3c   :  { %354 = vset.pattern.permute.xlu1 %v388_v2 }
  0x3d   :  { %37 = vperm.xlu1 %354, %v24_v22  }
  0x41   :  { %356 = vset.pattern.permute.xlu1 %v402_v23 }
  0x42   :  { %222 = vperm.xlu1 %356, %v452_v5  }
  0x46   :  { %357 = vset.pattern.permute.xlu1 %v403_v24 }
  0x47   :  { %232 = vperm.xlu1 %357, %v452_v5  }
  0x4b   :  { %359 = vset.pattern.permute.xlu1 %v404_v25 }
  0x4c   :  { %252 = vperm.xlu1 %359, %v452_v5  }
  0x50   :  { %360 = vset.pattern.permute.xlu1 %v405_v26 }
  0x51   :  { %262 = vperm.xlu1 %360, %v452_v5  }
  0x55   :  { %362 = vset.pattern.permute.xlu1 %v406_v27 }
  0x56   :  { %282 = vperm.xlu1 %362, %v452_v5  }
  0x5a   :  { %363 = vset.pattern.permute.xlu1 %v400_v20 }
  0x5b   :  { %292 = vperm.xlu1 %363, %v452_v5  }
  0x7d   :  { %v70_v30 = vpop.permute.xlu1 %69  ;;  %v46_v33 = vpop.permute.xlu0 %45 }
  0x7e   :  { %v62_v37 = vmul.f32 %v498_v34, %v46_v33  ;;  %v84_v42 = vmul.f32 %v505_v40, %v70_v30 }
  0x81   :  { %v28_v38 = vpop.permute.xlu0 %27 }
  0x82   :  { %v33_v35 = vpop.permute.xlu1 %32  ;;  %v65_v41 = vadd.f32 %v62_v37, %v28_v38 }
  0x84   :  { %v87_v44 = vadd.f32 %v84_v42, %v65_v41 }
  0x85   :  { %v103_v47 = vpop.permute.xlu0 %102 }
  0x86   :  { %v97_v39 = vpop.permute.xlu1 %96  ;;  %v90_v46 = vmax.f32 %v87_v44, 0.0 }
  0x88   :  { %v108_v48 = vrot.slane %v90_v46, %v492_v31  ;;  %v118_v51 = vrot.slane %v90_v46, %v501_v36  ;;  %v128_v60 = vrot.slane %v90_v46, %v511_v56  ;;  %v138_v0 = vrot.slane %v90_v46, %v514_v57 }
  0x89   :  { %v148_v5 = vrot.slane %v90_v46, %v147_v61  ;;  %v158_v14 = vrot.slane %v90_v46, %v157_v6  ;;  %v168_v19 = vrot.slane %v90_v46, %v167_v11  ;;  %v178_v24 = vrot.slane %v90_v46, %v177_v17 }
  0x8a   :  { %v109_v50 = vmul.f32 %v108_v48, %v103_v47  ;;  %v113_v52 = vpop.permute.xlu0 %112 }
  0x8b   :  { %v123_v43 = vpop.permute.xlu1 %122  ;;  %v119_v55 = vmul.f32 %v118_v51, %v113_v52 }
  0x8c   :  { %v110_v54 = vadd.f32 %v109_v50, %v97_v39  ;;  %v129_v63 = vmul.f32 %v128_v60, %v123_v43 }
  0x8e   :  { %v120_v59 = vadd.f32 %v119_v55, %v110_v54 }
  0x8f   :  { %v133_v62 = vpop.permute.xlu0 %132 }
  0x90   :  { %v51_v45 = vpop.permute.xlu1 %50  ;;  %v130_v2 = vadd.f32 %v129_v63, %v120_v59  ;;  %v139_v3 = vmul.f32 %v138_v0, %v133_v62 }
  0x91   :  { %v63_v4 = vmul.f32 %v498_v34, %v51_v45 }
  0x92   :  { %v140_v9 = vadd.f32 %v139_v3, %v130_v2 }
  0x93   :  { %v66_v10 = vadd.f32 %v63_v4, %v33_v35 }
  0x94   :  { %v153_v13 = vpop.permute.xlu0 %152 }
  0x95   :  { %v74_v49 = vpop.permute.xlu1 %73  ;;  %v159_v18 = vmul.f32 %v158_v14, %v153_v13 }
  0x96   :  { %v85_v7 = vmul.f32 %v505_v40, %v74_v49 }
  0x98   :  { %v88_v15 = vadd.f32 %v85_v7, %v66_v10 }
  0x99   :  { %v183_v26 = vpop.permute.xlu0 %182 }
  0x9a   :  { %v143_v53 = vpop.permute.xlu1 %142  ;;  %v91_v21 = vmax.f32 %v88_v15, 0.0 }
  0x9b   :  { %v149_v8 = vmul.f32 %v148_v5, %v143_v53 }
  0x9c   :  { %v188_v27 = vrot.slane %v91_v21, %v492_v31  ;;  %v198_v35 = vrot.slane %v91_v21, %v501_v36  ;;  %v208_v41 = vrot.slane %v91_v21, %v511_v56  ;;  %v218_v44 = vrot.slane %v91_v21, %v514_v57 }
  0x9d   :  { %v150_v16 = vadd.f32 %v149_v8, %v140_v9  ;;  %v228_v48 = vrot.slane %v91_v21, %v147_v61  ;;  %v238_v55 = vrot.slane %v91_v21, %v157_v6  ;;  %v248_v63 = vrot.slane %v91_v21, %v167_v11 }
  0x9e   :  { %v189_v33 = vmul.f32 %v188_v27, %v183_v26  ;;  %v56_v37 = vpop.permute.xlu0 %55  ;;  %v258_v4 = vrot.slane %v91_v21, %v177_v17 }
  0x9f   :  { %v163_v58 = vpop.permute.xlu1 %162  ;;  %v160_v22 = vadd.f32 %v159_v18, %v150_v16  ;;  %v64_v42 = vmul.f32 %v498_v34, %v56_v37 }
  0xa0   :  { %v169_v23 = vmul.f32 %v168_v19, %v163_v58 }
  0xa2   :  { %v170_v28 = vadd.f32 %v169_v23, %v160_v22 }
  0xa3   :  { %v78_v49 = vpop.permute.xlu0 %77 }
  0xa4   :  { %v173_v1 = vpop.permute.xlu1 %172  ;;  %v86_v50 = vmul.f32 %v505_v40, %v78_v49 }
  0xa5   :  { %v179_v25 = vmul.f32 %v178_v24, %v173_v1 }
  0xa7   :  { %v180_v32 = vadd.f32 %v179_v25, %v170_v28 }
  0xa8   :  { %v243_v34 = vpop.permute.xlu0 %242 }
  0xa9   :  { %v193_v12 = vpop.permute.xlu1 %192  ;;  %v190_v29 = vadd.f32 %v189_v33, %v180_v32  ;;  %v249_v1 = vmul.f32 %v248_v63, %v243_v34 }
  0xaa   :  { %v199_v39 = vmul.f32 %v198_v35, %v193_v12 }
  0xac   :  { %v200_v45 = vadd.f32 %v199_v39, %v190_v29 }
  0xad   :  { %v273_v10 = vpop.permute.xlu0 %272 }
  0xae   :  { %v203_v20 = vpop.permute.xlu1 %202 }
  0xaf   :  { %v209_v43 = vmul.f32 %v208_v41, %v203_v20 }
  0xb1   :  { %v210_v51 = vadd.f32 %v209_v43, %v200_v45 }
  0xb3   :  { %v213_v30 = vpop.permute.xlu1 %212 }
  0xb4   :  { %v219_v46 = vmul.f32 %v218_v44, %v213_v30 }
  0xb6   :  { %v220_v54 = vadd.f32 %v219_v46, %v210_v51 }
  0xb8   :  { %v38_v38 = vpop.permute.xlu1 %37 }
  0xb9   :  { %v67_v52 = vadd.f32 %v64_v42, %v38_v38 }
  0xbb   :  { %v89_v59 = vadd.f32 %v86_v50, %v67_v52 }
  0xbd   :  { %v223_v47 = vpop.permute.xlu1 %222  ;;  %v92_v2 = vmax.f32 %v89_v59, 0.0 }
  0xbe   :  { %v229_v53 = vmul.f32 %v228_v48, %v223_v47 }
  0xbf   :  { %v268_v40 = vrot.slane %v92_v2, %v492_v31  ;;  %v278_v8 = vrot.slane %v92_v2, %v501_v36  ;;  %v288_v11 = vrot.slane %v92_v2, %v511_v56  ;;  %v298_v18 = vrot.slane %v92_v2, %v514_v57 }
  0xc0   :  { %v230_v60 = vadd.f32 %v229_v53, %v220_v54 }
  0xc1   :  { %v279_v13 = vmul.f32 %v278_v8, %v273_v10 }
  0xc2   :  { %v233_v58 = vpop.permute.xlu1 %232 }
  0xc3   :  { %v239_v62 = vmul.f32 %v238_v55, %v233_v58 }
  0xc5   :  { %v240_v0 = vadd.f32 %v239_v62, %v230_v60 }
  0xc7   :  { %v253_v3 = vpop.permute.xlu1 %252  ;;  %v250_v61 = vadd.f32 %v249_v1, %v240_v0 }
  0xc8   :  { %v259_v5 = vmul.f32 %v258_v4, %v253_v3 }
  0xca   :  { %v260_v9 = vadd.f32 %v259_v5, %v250_v61 }
  0xcc   :  { %v263_v7 = vpop.permute.xlu1 %262 }
  0xcd   :  { %v269_v6 = vmul.f32 %v268_v40, %v263_v7 }
  0xcf   :  { %v270_v12 = vadd.f32 %v269_v6, %v260_v9 }
  0xd1   :  { %v283_v14 = vpop.permute.xlu1 %282  ;;  %v280_v15 = vadd.f32 %v279_v13, %v270_v12 }
  0xd2   :  { %v289_v16 = vmul.f32 %v288_v11, %v283_v14 }
  0xd4   :  { %v290_v19 = vadd.f32 %v289_v16, %v280_v15 }
  0xd6   :  { %v293_v17 = vpop.permute.xlu1 %292 }
  0xd7   :  { %v299_v31 = vmul.f32 %v298_v18, %v293_v17 }
  0xd9   :  { %v300_v20 = vadd.f32 %v299_v31, %v290_v19 }
  0xdb   :  { %301 = vst [vmem:[#allocation2] sm:$0x3] %v300_v20 }
  0xdc   :  { %376 = shalt.err (!%p373_p4)
}
  0xdd   :  { %311 = dma.vmem_to_hbm [thread:$0]  %s309_s7, 32, %s542_s5, [#allocation3]  }
  0xde   :  { %385 = dma.done.wait [#allocation3], 32  }
  0xdf   :  { %386 = vsyncadd [#allocation3], 4294967264 }
  0xe0   :  { %315 = vsyncpa [#allocation3], 1 }

</bundles_post_ra>
